<compile_context>
chip_gen: v7x
topology: tpu7x:2x2x1
jax: 0.10.0
libtpu: 0.0.40
codegen_flags: <defaults>
</compile_context>

<pallas_src>
import jax
import jax.numpy as jnp
from jax.experimental import pallas as pl
from jax.experimental.pallas import tpu as pltpu

K = 3
CONV_LAYERS = (8, 16)
LINEAR_LAYERS = (16, 8)          # = tuple(reversed(conv_layers))
BN_EPS = 1e-5


# ----------------------------- Pallas kernel -------------------------------

def _make_tnet_feature_kernel(bb, k, c1, c2, n_valid, nb, multi_chunk, need_mask):
    """Conv1 -> Conv2 -> global max pool over points, for a (bb, k, nb) block.

    bb / k / c1 / c2 / n_valid / nb / multi_chunk / need_mask are trace-time
    Python constants.
    """
    assert not (need_mask and not multi_chunk)

    def kernel(x_ref, p1_ref, p2_ref, out_ref):
        # Packed param slabs: [W | shift] per layer (bias + eval-BN folded).
        w1 = p1_ref[:, :k]               # (c1, k)
        s1 = p1_ref[:, k:k + 1]          # (c1, 1)
        w2 = p2_ref[:, :c1]              # (c2, c1)
        s2 = p2_ref[:, c1:c1 + 1]        # (c2, 1)

        if multi_chunk:
            n = pl.program_id(1)

            @pl.when(n == 0)
            def _():
                # 0 is the exact identity here: pooled values are post-ReLU
                # (>= 0) and padded tail lanes are masked to 0 below.
                out_ref[...] = jnp.zeros_like(out_ref)

        if need_mask:
            # Tail-lane validity (hoisted out of the batch loop).  The select is
            # ~1 VPU op per vreg per chunk, far below the fixed per-step cost,
            # so it is not gated to the last chunk only.
            lane = jax.lax.broadcasted_iota(jnp.int32, (c2, nb), 1)
            valid = lane < (n_valid - n * nb)

        # Static unroll over the batch block; weights are shared, every load /
        # VPU op / MXU push stays lane-dense (points on the 128-lane axis).
        for bi in range(bb):
            x = x_ref[bi]                                        # (k, nb)
            h = jnp.dot(w1, x, preferred_element_type=jnp.float32) + s1
            h = jnp.maximum(h, 0.0)                              # (c1, nb)
            h = jnp.dot(w2, h, preferred_element_type=jnp.float32) + s2
            h = jnp.maximum(h, 0.0)                              # (c2, nb), >= 0
            if need_mask:
                h = jnp.where(valid, h, 0.0)                     # select, not mul
            cmax = jnp.max(h, axis=-1, keepdims=True)            # (c2, 1)
            if multi_chunk:
                out_ref[bi] = jnp.maximum(out_ref[bi], cmax)     # running max
            else:
                out_ref[bi] = cmax

    return kernel


def _pick_batch_block(batch, nb, max_points_per_step=65536, max_bb=8):
    """Largest divisor of `batch` that keeps the parallel grid axis >= 2 and the
    per-step point volume bounded (VMEM budget for the fat-tile fallback)."""
    cap = max(1, min(max_bb, max_points_per_step // max(nb, 1)))
    best = 1
    for d in range(1, min(batch, cap) + 1):
        if batch % d == 0 and batch // d >= 2:
            best = d
    return best


# ------------------------------- wrapper ------------------------------------

def tnet_forward(x_ncl, conv_slabs, head_params, *,
                 n_single_max=16384, nb_multi=8192):
    """x_ncl: (B, K, N) float32 (PyTorch Conv1d layout). Returns (B, K, K)."""
    p1, p2 = conv_slabs
    B, k, N = x_ncl.shape
    c1, c2 = p1.shape[0], p2.shape[0]
    assert p1.shape[1] == k + 1 and p2.shape[1] == c1 + 1

    x = x_ncl.astype(jnp.float32)

    if N <= n_single_max:
        nb = N                        # whole point axis per step (full-dim block)
        n_chunks = 1
    else:
        assert nb_multi % 128 == 0
        nb = nb_multi                 # lane-dense chunks, partial final block OK
        n_chunks = pl.cdiv(N, nb)
    multi_chunk = n_chunks > 1
    need_mask = multi_chunk and (N % nb != 0)

    bb = _pick_batch_block(B, nb)
    grid = (B // bb, n_chunks)

    kernel = _make_tnet_feature_kernel(bb, k, c1, c2, N, nb, multi_chunk, need_mask)

    pooled = pl.pallas_call(
        kernel,
        out_shape=jax.ShapeDtypeStruct((B, c2, 1), jnp.float32),
        grid_spec=pltpu.PrefetchScalarGridSpec(
            num_scalar_prefetch=0,
            grid=grid,
            in_specs=[
                pl.BlockSpec((bb, k, nb), lambda b, n: (b, 0, n)),
                pl.BlockSpec(p1.shape, lambda b, n: (0, 0)),
                pl.BlockSpec(p2.shape, lambda b, n: (0, 0)),
            ],
            out_specs=pl.BlockSpec((bb, c2, 1), lambda b, n: (b, 0, 0))),
        compiler_params=pltpu.CompilerParams(
            dimension_semantics=("parallel", "arbitrary"),
            vmem_limit_bytes=32 * 1024 * 1024),
    )(x, p1, p2)

    # Batched FC head over the whole batch (per perf review): three tiny
    # lane-dense matmuls; bias + eval-BN folded, identity folded into tbe.
    fw1, fs1, fw2, fs2, wt, tbe = head_params
    g = pooled[:, :, 0]                                   # (B, c2)
    g = jnp.maximum(g @ fw1.T + fs1, 0.0)
    g = jnp.maximum(g @ fw2.T + fs2, 0.0)
    t = g @ wt.T + tbe
    return t.reshape(B, k, k)


# --------------------------- parameter setup --------------------------------

def init_raw_params(key):
    """Deterministic synthetic params with the same shapes as the nn.Module."""
    specs = [("conv1", K, CONV_LAYERS[0]),
             ("conv2", CONV_LAYERS[0], CONV_LAYERS[1]),
             ("fc1", CONV_LAYERS[1], LINEAR_LAYERS[0]),
             ("fc2", LINEAR_LAYERS[0], LINEAR_LAYERS[1])]
    raw = {}
    for name, cin, cout in specs:
        key, kw, kb, kg, kbt, km, kv = jax.random.split(key, 7)
        bound = 1.0 / float(jnp.sqrt(cin))
        W = jax.random.uniform(kw, (cout, cin), jnp.float32, -bound, bound)
        b = jax.random.uniform(kb, (cout,), jnp.float32, -bound, bound)
        gamma = jax.random.uniform(kg, (cout,), jnp.float32, 0.5, 1.5)
        beta = jax.random.uniform(kbt, (cout,), jnp.float32, -0.5, 0.5)
        mean = jax.random.uniform(km, (cout,), jnp.float32, -0.5, 0.5)
        var = jax.random.uniform(kv, (cout,), jnp.float32, 0.5, 1.5)
        raw[name] = (W, b, gamma, beta, mean, var)
    key, k1, k2 = jax.random.split(key, 3)
    bound = 1.0 / float(jnp.sqrt(LINEAR_LAYERS[-1]))
    Wt = jax.random.uniform(k1, (K * K, LINEAR_LAYERS[-1]), jnp.float32, -bound, bound)
    bt = jax.random.uniform(k2, (K * K,), jnp.float32, -bound, bound)
    raw["transform"] = (Wt, bt)
    return raw


def kernel_params(raw):
    """Fold bias + eval-mode BN into (W', shift'); pack conv layers into slabs;
    fold eye into the transform bias."""
    def fold(W, b, g, beta, m, v):
        scale = g / jnp.sqrt(v + BN_EPS)
        Wf = W * scale[:, None]                           # (cout, cin), channel-major
        shift = scale * (b - m) + beta                    # (cout,)
        return Wf, shift

    W1, s1 = fold(*raw["conv1"])
    W2, s2 = fold(*raw["conv2"])
    p1 = jnp.concatenate([W1, s1[:, None]], axis=1)       # (c1, k+1)
    p2 = jnp.concatenate([W2, s2[:, None]], axis=1)       # (c2, c1+1)

    fW1, fs1 = fold(*raw["fc1"])
    fW2, fs2 = fold(*raw["fc2"])
    Wt, bt = raw["transform"]
    tbe = bt + jnp.eye(K, dtype=jnp.float32).reshape(-1)  # eye folded into bias
    return (p1, p2), (fW1, fs1, fW2, fs2, Wt, tbe)


# ---------------------------- pure-JAX reference ----------------------------

def tnet_reference(x_ncl, raw):
    def conv_bn_relu(h, W, b, g, beta, m, v):
        y = jnp.einsum("oc,bcn->bon", W, h) + b[None, :, None]
        y = g[None, :, None] * (y - m[None, :, None]) / jnp.sqrt(v[None, :, None] + BN_EPS) \
            + beta[None, :, None]
        return jnp.maximum(y, 0.0)

    def fc_bn_relu(h, W, b, g, beta, m, v):
        y = h @ W.T + b
        y = g * (y - m) / jnp.sqrt(v + BN_EPS) + beta
        return jnp.maximum(y, 0.0)

    h = conv_bn_relu(x_ncl, *raw["conv1"])
    h = conv_bn_relu(h, *raw["conv2"])
    h = jnp.max(h, axis=2)                                  # global max pool
    h = fc_bn_relu(h, *raw["fc1"])
    h = fc_bn_relu(h, *raw["fc2"])
    Wt, bt = raw["transform"]
    t = h @ Wt.T + bt
    B = x_ncl.shape[0]
    return t.reshape(B, K, K) + jnp.eye(K, dtype=jnp.float32)[None]


# --------------------------------- main --------------------------------------

if __name__ == "__main__":
    key = jax.random.PRNGKey(0)
    kx, kp = jax.random.split(key)

    raw = init_raw_params(kp)
    conv_slabs, head_params = kernel_params(raw)

    errs = []

    # 1) primary small test: B=2, N=16 -> single full-dim chunk, no pad, no mask
    B, N = 2, 16
    x = jax.random.normal(kx, (B, K, N), dtype=jnp.float32)   # PyTorch NCL layout
    out = jax.block_until_ready(tnet_forward(x, conv_slabs, head_params))
    assert out.shape == (B, K, K)
    errs.append(float(jnp.max(jnp.abs(out - tnet_reference(x, raw)))))

    # 2) multi-chunk fallback: forced small chunks -> running-max accumulator,
    #    partial final block (300 = 2*128 + 44) handled by the in-kernel mask
    x2 = jax.random.normal(jax.random.PRNGKey(1), (2, K, 300), dtype=jnp.float32)
    out2 = jax.block_until_ready(
        tnet_forward(x2, conv_slabs, head_params, n_single_max=0, nb_multi=128))
    errs.append(float(jnp.max(jnp.abs(out2 - tnet_reference(x2, raw)))))

    # 3) batch-blocked path: B=8 -> Bb=4 per step, parallel batch axis of 2
    x3 = jax.random.normal(jax.random.PRNGKey(2), (8, K, 256), dtype=jnp.float32)
    out3 = jax.block_until_ready(tnet_forward(x3, conv_slabs, head_params))
    errs.append(float(jnp.max(jnp.abs(out3 - tnet_reference(x3, raw)))))

    if max(errs) > 2e-3:
        raise SystemExit(f"mismatch: max abs err = {max(errs)}")

    print("KERNEL_OK")
</pallas_src>

<mosaic_0001>
module attributes {stable_mosaic.version = 11 : i64} {
  func.func @kernel(%arg0: i32, %arg1: i32, %arg2: memref<1x3x16xf32, #tpu.memory_space<vmem>>, %arg3: memref<8x4xf32, #tpu.memory_space<vmem>>, %arg4: memref<16x9xf32, #tpu.memory_space<vmem>>, %arg5: memref<1x16x1xf32, #tpu.memory_space<vmem>>) attributes {dimension_semantics = [#tpu.dimension_semantics<parallel>, #tpu.dimension_semantics<arbitrary>], iteration_bounds = array<i64: 2, 1>, scalar_prefetch = 0 : i64, scratch_operands = 0 : i64, tpu.core_type = #tpu.core_type<tc>, window_params = [{transform_indices = @transform_0, window_bounds = array<i64: 1, 3, 16>}, {pipeline_mode = #tpu.pipeline_mode<synchronous>, transform_indices = @transform_1, window_bounds = array<i64: 8, 4>}, {pipeline_mode = #tpu.pipeline_mode<synchronous>, transform_indices = @transform_2, window_bounds = array<i64: 16, 9>}, {transform_indices = @transform_3, window_bounds = array<i64: 1, 16, 1>}]} {
    %c0 = arith.constant 0 : index
    %c0_0 = arith.constant 0 : index
    %0 = vector.load %arg3[%c0, %c0_0] : memref<8x4xf32, #tpu.memory_space<vmem>>, vector<8x3xf32>
    %c0_1 = arith.constant 0 : index
    %c3 = arith.constant 3 : index
    %1 = vector.load %arg3[%c0_1, %c3] : memref<8x4xf32, #tpu.memory_space<vmem>>, vector<8x1xf32>
    %c0_2 = arith.constant 0 : index
    %c0_3 = arith.constant 0 : index
    %2 = vector.load %arg4[%c0_2, %c0_3] : memref<16x9xf32, #tpu.memory_space<vmem>>, vector<16x8xf32>
    %c0_4 = arith.constant 0 : index
    %c8 = arith.constant 8 : index
    %3 = vector.load %arg4[%c0_4, %c8] : memref<16x9xf32, #tpu.memory_space<vmem>>, vector<16x1xf32>
    %c0_5 = arith.constant 0 : index
    %c0_6 = arith.constant 0 : index
    %c0_7 = arith.constant 0 : index
    %4 = vector.load %arg2[%c0_5, %c0_6, %c0_7] : memref<1x3x16xf32, #tpu.memory_space<vmem>>, vector<1x3x16xf32>
    %5 = vector.shape_cast %4 : vector<1x3x16xf32> to vector<3x16xf32>
    %cst = arith.constant dense<0.000000e+00> : vector<8x16xf32>
    %6 = tpu.matmul %0, %5, %cst {dimension_numbers = #tpu.dot_dimension_numbers<[1], [0], [0], [1], [0, 0, 1, 1], [], []>} : vector<8x3xf32>, vector<3x16xf32>, vector<8x16xf32> -> vector<8x16xf32>
    %7 = vector.broadcast %1 : vector<8x1xf32> to vector<8x16xf32>
    %8 = arith.addf %6, %7 : vector<8x16xf32>
    %cst_8 = arith.constant 0.000000e+00 : f32
    %9 = vector.broadcast %cst_8 : f32 to vector<8x16xf32>
    %10 = arith.maximumf %8, %9 : vector<8x16xf32>
    %cst_9 = arith.constant dense<0.000000e+00> : vector<16x16xf32>
    %11 = tpu.matmul %2, %10, %cst_9 {dimension_numbers = #tpu.dot_dimension_numbers<[1], [0], [0], [1], [0, 0, 1, 1], [], []>} : vector<16x8xf32>, vector<8x16xf32>, vector<16x16xf32> -> vector<16x16xf32>
    %12 = vector.broadcast %3 : vector<16x1xf32> to vector<16x16xf32>
    %13 = arith.addf %11, %12 : vector<16x16xf32>
    %cst_10 = arith.constant 0.000000e+00 : f32
    %14 = vector.broadcast %cst_10 : f32 to vector<16x16xf32>
    %15 = arith.maximumf %13, %14 : vector<16x16xf32>
    %cst_11 = arith.constant dense<0xFF800000> : vector<16xf32>
    %16 = vector.multi_reduction <maximumf>, %15, %cst_11 [1] : vector<16x16xf32> to vector<16xf32>
    %17 = vector.shape_cast %16 : vector<16xf32> to vector<16x1xf32>
    %c0_12 = arith.constant 0 : index
    %c0_13 = arith.constant 0 : index
    %c0_14 = arith.constant 0 : index
    %18 = vector.load %arg5[%c0_12, %c0_13, %c0_14] : memref<1x16x1xf32, #tpu.memory_space<vmem>>, vector<1x16x1xf32>
    %19 = vector.shape_cast %18 : vector<1x16x1xf32> to vector<16x1xf32>
    %20 = vector.shape_cast %17 : vector<16x1xf32> to vector<1x16x1xf32>
    tpu.vector_store %arg5[%c0_12, %c0_13, %c0_14], %20 {strides = array<i32>} : memref<1x16x1xf32, #tpu.memory_space<vmem>>, vector<1x16x1xf32>,
    return
  }
  func.func @transform_0(%arg0: i32, %arg1: i32) -> (i32, i32, i32) {
    %c0_i32 = arith.constant 0 : i32
    %c0_i32_0 = arith.constant 0 : i32
    return %arg0, %c0_i32, %arg1 : i32, i32, i32
  }
  func.func @transform_1(%arg0: i32, %arg1: i32) -> (i32, i32) {
    %c0_i32 = arith.constant 0 : i32
    %c0_i32_0 = arith.constant 0 : i32
    %c0_i32_1 = arith.constant 0 : i32
    return %c0_i32, %c0_i32_0 : i32, i32
  }
  func.func @transform_2(%arg0: i32, %arg1: i32) -> (i32, i32) {
    %c0_i32 = arith.constant 0 : i32
    %c0_i32_0 = arith.constant 0 : i32
    %c0_i32_1 = arith.constant 0 : i32
    return %c0_i32, %c0_i32_0 : i32, i32
  }
  func.func @transform_3(%arg0: i32, %arg1: i32) -> (i32, i32, i32) {
    %c0_i32 = arith.constant 0 : i32
    %c0_i32_0 = arith.constant 0 : i32
    %c0_i32_1 = arith.constant 0 : i32
    return %arg0, %c0_i32, %c0_i32_0 : i32, i32, i32
  }
}

</mosaic_0001>

<bundles_post_ra>
// kernel: tpu_custom_call.1
= control target key start
LH: loop header
LB: loop body
LE: loop exit
PB: predicated region body
PF: predicated region fallthrough
CT: control target
= control target key end

     0   :  { %s555_s12 = smov 0   ;;  %s557_s13 = smov 0   ;;  %s601_s0 = inlined_call_operand.vmem [shape: f32[2,3,16], index: 0, kind: input, shape index: {}]   ;;  %s602_s1 = inlined_call_operand.vmem [shape: f32[8,4], index: 1, kind: input, shape index: {}]   ;;  %s603_s2 = inlined_call_operand.vmem [shape: f32[16,9], index: 2, kind: input, shape index: {}]   ;;  %s604_s3 = inlined_call_operand.vmem [shape: f32[2,16,1], index: 3, kind: output, shape index: {}]  }
   0x1   :  { %s559_s14 = smov 0  }
   0x2 LB: > { %s25_s15 = sadd.s32 1, %s525_s13  ;;  %p450_p0 = scmp.ge.s32.totalorder %s529_s14, 1  ;;  %s529_s14 = sphi %s559_s14, %s13_s14   ;;  %s525_s13 = sphi %s557_s13, %s606_s13   ;;  %s521_s12 = sphi %s555_s12, %s605_s12  }
   0x3   : > { %p27_p1 = scmp.ge.s32.totalorder %s25_s15, 2  ;;  %p153_p2 = scmp.lt.s32.totalorder %s529_s14, 3 }
   0x5   : > { %s608_s15 = smov (%p27_p1, %s25_s15), 0  ;;  %p154_p3 = pnand %p450_p0, %p153_p2 }
   0x6   : > { %p179_p4 = scmp.lt.s32.totalorder (!%p154_p3), %s521_s12, 1  ;;  %v531_v0 = vmov (!%p154_p3), 0.0   ;;  %vm532_vm0 = vmmov (!%p154_p3), 0   ;;  %v191_v1 = vld [vmem:[%s602_s1] sm:$0xff] (!%p154_p3)  ;;  %v533_v2 = vmov (!%p154_p3), 3   ;;  %vm203_vm1 = vcmask (!%p154_p3), 1042432  }
   0x7   : > { %157 = sbr.rel (%p154_p3) target bundleno = 598 (0x256), region = 32  ;;  %466 = vmatprep.subr.mxu0 (!%p154_p3), %v531_v0  ;;  %468 = vmatprep.mubr.msk.f32.mxu0 (!%p154_p3), %vm532_vm0, %v531_v0  ;;  %vm200_vm2 = vcmask (!%p154_p3), 23552   ;;  %v192_v4 = vld [vmem:[%s603_s2] sm:$0xff] (!%p154_p3)  ;;  %vm288_vm3 = vcmask (!%p154_p3), 64512   ;;  %v193_v5 = vld [vmem:[%s603_s2 + $0x8] sm:$0xff] (!%p154_p3)  ;;  %v534_v6 = vmov (!%p154_p3), 8  }
   0x8   : > { %504 = vset.pattern.permute.xlu0 (!%p154_p3), %v533_v2  ;;  %473 = vmatprep.mubr.msk.f32.mxu1 (!%p154_p3), %vm288_vm3, %v192_v4  ;;  %vm370_vm4 = vcmask (!%p154_p3), 130048   ;;  %vm377_vm5 = vcmask (!%p154_p3), 7168  }
   0x9   : > { %197 = vperm.xlu0 (!%p154_p3), %504, %v191_v1   ;;  %506 = vset.pattern.permute.xlu1 (!%p154_p3), %v534_v6 }
   0xa   : > { %285 = vperm.xlu1 (!%p154_p3), %506, %v193_v5  }
   0xd   : > { %505 = vset.pattern.permute.xlu0 (!%p154_p3), %v534_v6 }
   0xe   : > { %s610_s12 = smov (!%p179_p4, %s521_s12), 1  ;;  %280 = vperm.xlu0 %505, %v192_v4  }
   0xf   : > { %s451_s18 = sshll.u32 %s610_s12, 2  ;;  %s460_s26 = sshll.u32 %s610_s12, 4 }
  0x10   : > { %s185_s21 = scalar_lea.vmem %s601_s0, %s451_s18  ;;  %s190_s29 = scalar_lea.vmem %s604_s3, %s460_s26 }
  0x11   : > { %v194_v3 = vld [vmem:[%s185_s21] sm:$0x7] }
  0x12   : > { %467 = vmatpush3.msk.msra.mxu0 %vm203_vm1, %v194_v3 }
  0x13   : > { %469 = vmatmul.mubr.msk.f32.vlgmr.msra.gmra.mrb[0].mxu0 %vm200_vm2, %v191_v1 }
  0x88   : > { %v198_v7 = vpop.permute.xlu0 %197 }
  0x89   : > { %v286_v12 = vpop.permute.xlu1 %285 }
  0x8d   : > { %v281_v13 = vpop.permute.xlu0 %280 }
  0xe6   : > { %v273_v8 = vpop.f32.mrb[0].mxu0 }
  0xe7   : > { %v274_v9 = vadd.f32 %v273_v8, %v198_v7  ;;  %v470_v10 = vpop.f32.mrb[1].mxu0 }
  0xe9   : > { %v277_v11 = vmax.f32 %v274_v9, 0.0 }
  0xeb   : > { %471 = vmatprep.subr.mxu1 %v277_v11 }
  0xec   : > { %472 = vmatpush3.msra.mxu1 %v277_v11 }
  0xed   : > { %474 = vmatmul.mubr.msk.f32.vlgmr.msra.gmra.mrb[0].mxu1 %vm288_vm3, %v193_v5 }
 0x1c0   : > { %v475_v14 = vpop.f32.mrb[0].mxu1 }
 0x1c1   : > { %v365_v15 = vadd.f32 %v475_v14, %v286_v12  ;;  %v359_v16 = vpop.f32.mrb[1].mxu1 }
 0x1c2   : > { %v360_v17 = vadd.f32 %v359_v16, %v281_v13 }
 0x1c3   : > { %v369_v18 = vmax.f32 %v365_v15, 0.0 }
 0x1c4   : > { %v368_v19 = vmax.f32 %v360_v17, 0.0 }
 0x1c5   : > { %v374_v20 = vsel %vm370_vm4, %v369_v18, -inf }
 0x1c6   : > { %375 = vmax.xlane.f32.xlu0 %v374_v20  ;;  %v371_v21 = vsel %vm370_vm4, %v368_v19, -inf }
 0x1c7   : > { %372 = vmax.xlane.f32.xlu1 %v371_v21 }
 0x253   : > { %v376_v22 = vpop.xlane.xlu0 %375 }
 0x254   : > { %379 = vst.msk [vmem:[%s190_s29 + $0x8] sm:$0xff] %vm377_vm5, %v376_v22  ;;  %v373_v23 = vpop.xlane.xlu1 %372 }
 0x255   : > { %378 = vst.msk [vmem:[%s190_s29] sm:$0xff] %vm377_vm5, %v373_v23 }
 0x256 PF: > { %s13_s14 = sadd.s32 1, %s529_s14   ;;  %s605_s12 = smov %s525_s13 }
 0x257   : > { %p10_p5 = scmp.ge.s32.totalorder %s13_s14, 4   ;;  %s606_s13 = smov %s608_s15 }
 0x259   :  { %12 = sbr.rel (!%p10_p5) target bundleno = 2 (0x2), region = 62 }

</bundles_post_ra>
